<compile_context>
chip_gen: v7x
topology: tpu7x:2x2x1
jax: 0.10.0
libtpu: 0.0.40
codegen_flags: <defaults>
</compile_context>

<pallas_src>
import jax
import jax.numpy as jnp
from jax.experimental import pallas as pl
from jax.experimental.pallas import tpu as pltpu

LN_EPS = 1e-5


def mlp_kernel(x_ref, w1_ref, p_ref, o_ref):
    # x:  (TB, N)    f32   (cast to bf16 in-kernel for the MXU feed)
    # w1: (N, L1)    bf16  (VMEM-resident)
    # p:  (5, L1)    f32   rows: [b1, gamma, beta, w2_row, b2(broadcast)]
    # o:  (1, 1, TB) f32   lane-dense output row for this batch tile
    b1 = p_ref[0:1, :]
    gamma = p_ref[1:2, :]
    beta = p_ref[2:3, :]
    w2_row = p_ref[3:4, :]
    b2 = p_ref[4:5, 0:1]  # (1, 1)

    # Linear 1 on the MXU: bf16 operands (in-kernel cast, VPU ~free), f32 acc.
    x_bf = x_ref[...].astype(jnp.bfloat16)
    h = jnp.dot(x_bf, w1_ref[...], preferred_element_type=jnp.float32) + b1

    # LayerNorm over last dim (biased variance, matches torch.nn.LayerNorm).
    l1 = h.shape[-1]
    inv_l1 = 1.0 / float(l1)
    s1 = jnp.sum(h, axis=-1, keepdims=True)
    s2 = jnp.sum(h * h, axis=-1, keepdims=True)
    mean = s1 * inv_l1
    # Clamp: E[h^2] - mean^2 can go slightly negative via cancellation -> NaN.
    var = jnp.maximum(s2 * inv_l1 - mean * mean, 0.0)
    inv = jax.lax.rsqrt(var + LN_EPS)
    hn = (h - mean) * inv * gamma + beta

    # ReLU
    r = jnp.maximum(hn, 0.0)

    # Linear 2 (l1 -> 1): contract w2_row (1,L1) with r (TB,L1) over L1
    # (rhs-transposed MXU dot, same pattern as attention Q.K^T). Result lands
    # directly as a lane-dense (1, TB) row.
    out_row = jax.lax.dot_general(
        w2_row, r,
        dimension_numbers=(((1,), (1,)), ((), ())),
        preferred_element_type=jnp.float32,
    ) + b2  # (1, TB)
    o_ref[0] = out_row.astype(o_ref.dtype)


def _round_up(a, b):
    return (a + b - 1) // b * b


def _choose_tb(B, cap=2048, floor=512, min_steps=8):
    """Batch-tile size: big tiles amortize the ~0.35us/step fixed overhead,
    but keep ~min_steps grid steps at large B so v7x's 2 TCs both get work."""
    if B <= floor:
        return _round_up(B, 8)                  # single tile; grid=(1,)
    tb = _round_up(pl.cdiv(B, min_steps), 128)  # lane-friendly tile width
    return max(floor, min(tb, cap))


def pack_params(params):
    """One-time, hoisted-out-of-forward parameter prep:
      - w1 cast to bf16 for the MXU feed
      - b1/gamma/beta/w2_row/b2 packed into a single (5, L1) f32 block
        (one small resident DMA instead of five tiny ones)."""
    L1 = params["w1"].shape[1]
    w1_bf = params["w1"].astype(jnp.bfloat16)
    packed = jnp.concatenate(
        [
            params["b1"],
            params["gamma"],
            params["beta"],
            params["w2"],                              # (1, L1) row
            jnp.broadcast_to(params["b2"], (1, L1)),   # b2 replicated
        ],
        axis=0,
    ).astype(jnp.float32)
    return w1_bf, packed


def neural_network_forward(x, w1_bf, packed, *, tb=None):
    """x: (B, num_input) float32. w1_bf / packed: from pack_params()."""
    B, N = x.shape
    L1 = w1_bf.shape[1]

    if tb is None:
        tb = _choose_tb(B)
    tb = min(tb, _round_up(B, 8))
    num_tiles = pl.cdiv(B, tb)

    out = pl.pallas_call(
        mlp_kernel,
        out_shape=jax.ShapeDtypeStruct((num_tiles, 1, tb), jnp.float32),
        grid_spec=pltpu.PrefetchScalarGridSpec(
            num_scalar_prefetch=0,
            grid=(num_tiles,),
            in_specs=[
                # x streamed per tile as f32 (no wrapper cast/pad pass over x);
                # a partial tail block's garbage rows are discarded below.
                pl.BlockSpec((tb, N), lambda i: (i, 0)),
                pl.BlockSpec((N, L1), lambda i: (0, 0)),   # w1: VMEM-resident
                pl.BlockSpec((5, L1), lambda i: (0, 0)),   # packed params: resident
            ],
            out_specs=pl.BlockSpec((1, 1, tb), lambda i: (i, 0, 0)),
        ),
        compiler_params=pltpu.CompilerParams(
            dimension_semantics=("parallel",),  # megacore sharding on v7x
        ),
    )(x, w1_bf, packed)

    # (num_tiles, 1, tb) -> (B, 1); tail-tile padding rows dropped.
    return out.reshape(num_tiles * tb, 1)[:B]


def init_params(key, num_input, l1):
    """Deterministic init mirroring torch defaults (uniform +/- 1/sqrt(fan_in))."""
    k1, k2, k3, k4 = jax.random.split(key, 4)
    bound1 = 1.0 / jnp.sqrt(num_input)
    bound2 = 1.0 / jnp.sqrt(l1)
    return {
        # stored as (in, out) so kernel does x @ W
        "w1": jax.random.uniform(k1, (num_input, l1), jnp.float32, -bound1, bound1),
        "b1": jax.random.uniform(k2, (1, l1), jnp.float32, -bound1, bound1),
        "gamma": jnp.ones((1, l1), jnp.float32),   # nn.LayerNorm weight init
        "beta": jnp.zeros((1, l1), jnp.float32),   # nn.LayerNorm bias init
        # second linear stored as a (1, l1) row
        "w2": jax.random.uniform(k3, (1, l1), jnp.float32, -bound2, bound2),
        "b2": jax.random.uniform(k4, (1, 1), jnp.float32, -bound2, bound2),
    }


def reference_forward(x, p, *, mxu_dtype=jnp.float32):
    """Pure-JAX reference. mxu_dtype=bfloat16 mirrors the kernel's MXU feed."""
    h = jnp.dot(
        x.astype(mxu_dtype),
        p["w1"].astype(mxu_dtype),
        preferred_element_type=jnp.float32,
    ) + p["b1"]
    mean = h.mean(-1, keepdims=True)
    var = jnp.maximum((h * h).mean(-1, keepdims=True) - mean * mean, 0.0)
    hn = (h - mean) * jax.lax.rsqrt(var + LN_EPS) * p["gamma"] + p["beta"]
    r = jnp.maximum(hn, 0.0)
    return jnp.sum(r * p["w2"], axis=-1, keepdims=True) + p["b2"]


if __name__ == "__main__":
    B, NUM_INPUT, L1 = 8, 256, 128

    key = jax.random.PRNGKey(0)
    kx, kp = jax.random.split(key)

    # "Image-like" input (B, 2, 8, 16) that nn.Flatten maps to (B, 256)
    x_raw = jax.random.normal(kx, (B, 2, 8, 16), jnp.float32)
    x = x_raw.reshape(B, -1)  # flatten (glue in plain JAX, same as nn.Flatten)

    params = init_params(kp, NUM_INPUT, L1)
    w1_bf, packed = pack_params(params)   # hoisted one-time param prep

    out = jax.block_until_ready(neural_network_forward(x, w1_bf, packed))
    assert out.shape == (B, 1)

    # Tight check vs a reference that mirrors the bf16 MXU feed.
    ref_bf16 = reference_forward(x, params, mxu_dtype=jnp.bfloat16)
    assert jnp.allclose(out, ref_bf16, atol=1e-4, rtol=1e-4)

    # Loose sanity check vs the full-f32 (torch-semantics) reference.
    ref_f32 = reference_forward(x, params, mxu_dtype=jnp.float32)
    assert jnp.allclose(out, ref_f32, atol=2e-2, rtol=2e-2)

    print("KERNEL_OK")
</pallas_src>

<mosaic_0001>
module attributes {stable_mosaic.version = 11 : i64} {
  func.func @mlp_kernel(%arg0: i32, %arg1: memref<8x256xf32, #tpu.memory_space<vmem>>, %arg2: memref<256x128xbf16, #tpu.memory_space<vmem>>, %arg3: memref<5x128xf32, #tpu.memory_space<vmem>>, %arg4: memref<1x1x8xf32, #tpu.memory_space<vmem>>) attributes {dimension_semantics = [#tpu.dimension_semantics<parallel>], iteration_bounds = array<i64: 1>, scalar_prefetch = 0 : i64, scratch_operands = 0 : i64, tpu.core_type = #tpu.core_type<tc>, window_params = [{transform_indices = @transform_0, window_bounds = array<i64: 8, 256>}, {pipeline_mode = #tpu.pipeline_mode<synchronous>, transform_indices = @transform_1, window_bounds = array<i64: 256, 128>}, {pipeline_mode = #tpu.pipeline_mode<synchronous>, transform_indices = @transform_2, window_bounds = array<i64: 5, 128>}, {transform_indices = @transform_3, window_bounds = array<i64: 1, 1, 8>}]} {
    %c0 = arith.constant 0 : index
    %c0_0 = arith.constant 0 : index
    %0 = vector.load %arg3[%c0, %c0_0] : memref<5x128xf32, #tpu.memory_space<vmem>>, vector<1x128xf32>
    %c1 = arith.constant 1 : index
    %c0_1 = arith.constant 0 : index
    %1 = vector.load %arg3[%c1, %c0_1] : memref<5x128xf32, #tpu.memory_space<vmem>>, vector<1x128xf32>
    %c2 = arith.constant 2 : index
    %c0_2 = arith.constant 0 : index
    %2 = vector.load %arg3[%c2, %c0_2] : memref<5x128xf32, #tpu.memory_space<vmem>>, vector<1x128xf32>
    %c3 = arith.constant 3 : index
    %c0_3 = arith.constant 0 : index
    %3 = vector.load %arg3[%c3, %c0_3] : memref<5x128xf32, #tpu.memory_space<vmem>>, vector<1x128xf32>
    %c4 = arith.constant 4 : index
    %c0_4 = arith.constant 0 : index
    %4 = vector.load %arg3[%c4, %c0_4] : memref<5x128xf32, #tpu.memory_space<vmem>>, vector<1x1xf32>
    %c0_5 = arith.constant 0 : index
    %c0_6 = arith.constant 0 : index
    %5 = vector.load %arg1[%c0_5, %c0_6] : memref<8x256xf32, #tpu.memory_space<vmem>>, vector<8x256xf32>
    %6 = arith.truncf %5 : vector<8x256xf32> to vector<8x256xbf16>
    %c0_7 = arith.constant 0 : index
    %c0_8 = arith.constant 0 : index
    %7 = vector.load %arg2[%c0_7, %c0_8] : memref<256x128xbf16, #tpu.memory_space<vmem>>, vector<256x128xbf16>
    %cst = arith.constant dense<0.000000e+00> : vector<8x128xf32>
    %8 = tpu.matmul %6, %7, %cst {dimension_numbers = #tpu.dot_dimension_numbers<[1], [0], [0], [1], [0, 0, 1, 1], [], []>} : vector<8x256xbf16>, vector<256x128xbf16>, vector<8x128xf32> -> vector<8x128xf32>
    %9 = vector.broadcast %0 : vector<1x128xf32> to vector<8x128xf32>
    %10 = arith.addf %8, %9 : vector<8x128xf32>
    %cst_9 = arith.constant dense<0.000000e+00> : vector<8xf32>
    %11 = vector.multi_reduction <add>, %10, %cst_9 [1] : vector<8x128xf32> to vector<8xf32>
    %12 = vector.shape_cast %11 : vector<8xf32> to vector<8x1xf32>
    %13 = arith.mulf %10, %10 : vector<8x128xf32>
    %cst_10 = arith.constant dense<0.000000e+00> : vector<8xf32>
    %14 = vector.multi_reduction <add>, %13, %cst_10 [1] : vector<8x128xf32> to vector<8xf32>
    %15 = vector.shape_cast %14 : vector<8xf32> to vector<8x1xf32>
    %cst_11 = arith.constant 7.812500e-03 : f32
    %16 = vector.broadcast %cst_11 : f32 to vector<8x1xf32>
    %17 = arith.mulf %12, %16 : vector<8x1xf32>
    %cst_12 = arith.constant 7.812500e-03 : f32
    %18 = vector.broadcast %cst_12 : f32 to vector<8x1xf32>
    %19 = arith.mulf %15, %18 : vector<8x1xf32>
    %20 = arith.mulf %17, %17 : vector<8x1xf32>
    %21 = arith.subf %19, %20 : vector<8x1xf32>
    %cst_13 = arith.constant 0.000000e+00 : f32
    %22 = vector.broadcast %cst_13 : f32 to vector<8x1xf32>
    %23 = arith.maximumf %21, %22 : vector<8x1xf32>
    %cst_14 = arith.constant 9.99999974E-6 : f32
    %24 = vector.broadcast %cst_14 : f32 to vector<8x1xf32>
    %25 = arith.addf %23, %24 : vector<8x1xf32>
    %26 = math.rsqrt %25 : vector<8x1xf32>
    %27 = vector.broadcast %17 : vector<8x1xf32> to vector<8x128xf32>
    %28 = arith.subf %10, %27 : vector<8x128xf32>
    %29 = vector.broadcast %26 : vector<8x1xf32> to vector<8x128xf32>
    %30 = arith.mulf %28, %29 : vector<8x128xf32>
    %31 = vector.broadcast %1 : vector<1x128xf32> to vector<8x128xf32>
    %32 = arith.mulf %30, %31 : vector<8x128xf32>
    %33 = vector.broadcast %2 : vector<1x128xf32> to vector<8x128xf32>
    %34 = arith.addf %32, %33 : vector<8x128xf32>
    %cst_15 = arith.constant 0.000000e+00 : f32
    %35 = vector.broadcast %cst_15 : f32 to vector<8x128xf32>
    %36 = arith.maximumf %34, %35 : vector<8x128xf32>
    %cst_16 = arith.constant dense<0.000000e+00> : vector<1x8xf32>
    %37 = tpu.matmul %3, %36, %cst_16 {dimension_numbers = #tpu.dot_dimension_numbers<[1], [1], [0], [0], [0, 0, 1, 0], [], []>} : vector<1x128xf32>, vector<8x128xf32>, vector<1x8xf32> -> vector<1x8xf32>
    %38 = vector.broadcast %4 : vector<1x1xf32> to vector<1x8xf32>
    %39 = arith.addf %37, %38 : vector<1x8xf32>
    %c0_17 = arith.constant 0 : index
    %c0_18 = arith.constant 0 : index
    %c0_19 = arith.constant 0 : index
    %40 = vector.load %arg4[%c0_17, %c0_18, %c0_19] : memref<1x1x8xf32, #tpu.memory_space<vmem>>, vector<1x1x8xf32>
    %41 = vector.shape_cast %40 : vector<1x1x8xf32> to vector<1x8xf32>
    %42 = vector.shape_cast %39 : vector<1x8xf32> to vector<1x1x8xf32>
    tpu.vector_store %arg4[%c0_17, %c0_18, %c0_19], %42 {strides = array<i32>} : memref<1x1x8xf32, #tpu.memory_space<vmem>>, vector<1x1x8xf32>,
    return
  }
  func.func @transform_0(%arg0: i32) -> (i32, i32) {
    %c0_i32 = arith.constant 0 : i32
    %c0_i32_0 = arith.constant 0 : i32
    return %arg0, %c0_i32 : i32, i32
  }
  func.func @transform_1(%arg0: i32) -> (i32, i32) {
    %c0_i32 = arith.constant 0 : i32
    %c0_i32_0 = arith.constant 0 : i32
    %c0_i32_1 = arith.constant 0 : i32
    return %c0_i32, %c0_i32_0 : i32, i32
  }
  func.func @transform_2(%arg0: i32) -> (i32, i32) {
    %c0_i32 = arith.constant 0 : i32
    %c0_i32_0 = arith.constant 0 : i32
    %c0_i32_1 = arith.constant 0 : i32
    return %c0_i32, %c0_i32_0 : i32, i32
  }
  func.func @transform_3(%arg0: i32) -> (i32, i32, i32) {
    %c0_i32 = arith.constant 0 : i32
    %c0_i32_0 = arith.constant 0 : i32
    %c0_i32_1 = arith.constant 0 : i32
    return %arg0, %c0_i32, %c0_i32_0 : i32, i32, i32
  }
}

</mosaic_0001>

<bundles_post_ra>
// kernel: tpu_custom_call.1
= control target key start
LH: loop header
LB: loop body
LE: loop exit
PB: predicated region body
PF: predicated region fallthrough
CT: control target
= control target key end

     0   :  { %8 = vsyncpa [#allocation3], 0  ;;  %s600_s0 = inlined_call_operand.hbm [shape: f32[8,256], index: 0, kind: input, shape index: {}]   ;;  %s601_s1 = inlined_call_operand.hbm [shape: bf16[256,128], index: 1, kind: input, shape index: {}]   ;;  %s602_s2 = inlined_call_operand.hbm [shape: f32[5,128], index: 2, kind: input, shape index: {}]   ;;  %s603_s3 = inlined_call_operand.hbm [shape: f32[1,1,8], index: 3, kind: output, shape index: {}]  }
   0x1   :  { %9 = vsyncpa [#allocation6], 0 }
   0x2   :  { %10 = vsyncpa [#allocation4], 0  ;;  %s523_s12 = smov [#allocation5]   ;;  %s429_s16 = scalar_lea.hbm %s601_s1, 2048 }
   0x3   :  { %s26_s13 = sshll.u32 %s523_s12, 4  ;;  %p430_p0 = scmp.ne.s32.totalorder %s601_s1, %s429_s16  ;;  %s27_s13 = int_to_ptr.vmem [resolvable:$true] %s26_s13 }
   0x4   :  { %p433_p1 = scmp.lt.u32.totalorder %s429_s16, %s601_s1 }
   0x6   :  { %p435_p2 = pnand %p433_p1, %p430_p0 }
   0x8   :  { %438 = shalt.err (!%p435_p2)
}
   0x9   :  { %s439_s21 = scalar_lea.vmem %s27_s13, 2048  ;;  %p444_p4 = scmp.lt.s32.totalorder %s27_s13, %s27_s13 }
   0xa   :  { %p440_p3 = scmp.ne.s32.totalorder %s27_s13, %s439_s21  ;;  %p445_p5 = scmp.lt.s32.totalorder %s439_s21, %s439_s21 }
   0xc   :  { %p446_p6 = por %p445_p5, %p444_p4 }
   0xe   :  { %p447_p7 = pnand %p446_p6, %p440_p3 }
  0x10   :  { %450 = shalt.err (!%p447_p7)
}
  0x11   :  { %s524_s22 = smov 64   ;;  %s525_s23 = smov 4  }
  0x12   :  { %32 = dma.hbm_to_vmem [thread:$0]  %s601_s1, 2048, %s27_s13, [#allocation6], %s524_s22, %s524_s22, %s525_s23  }
  0x13   :  { %s526_s26 = smov [#allocation2]   ;;  %s527_s28 = smov [#allocation7]  }
  0x14   :  { %s17_s27 = sshll.u32 %s526_s26, 4  ;;  %s39_s29 = sshll.u32 %s527_s28, 4  ;;  %s18_s27 = int_to_ptr.vmem [resolvable:$true] %s17_s27  ;;  %s40_s29 = int_to_ptr.vmem [resolvable:$true] %s39_s29 }
  0x15   :  { %s451_s5 = scalar_lea.hbm %s600_s0, 256 }
  0x16   :  { %p452_p8 = scmp.ne.s32.totalorder %s600_s0, %s451_s5  ;;  %p455_p9 = scmp.lt.u32.totalorder %s451_s5, %s600_s0 }
  0x18   :  { %p457_p10 = pnand %p455_p9, %p452_p8 }
  0x1a   :  { %460 = shalt.err (!%p457_p10)
}
  0x1b   :  { %s461_s1 = scalar_lea.vmem %s18_s27, 256  ;;  %p466_p12 = scmp.lt.s32.totalorder %s18_s27, %s18_s27 }
  0x1c   :  { %p462_p11 = scmp.ne.s32.totalorder %s18_s27, %s461_s1  ;;  %p467_p13 = scmp.lt.s32.totalorder %s461_s1, %s461_s1 }
  0x1e   :  { %p468_p0 = por %p467_p13, %p466_p12 }
  0x20   :  { %p469_p1 = pnand %p468_p0, %p462_p11 }
  0x22   :  { %472 = shalt.err (!%p469_p1)
}
  0x23   :  { %20 = dma.hbm_to_vmem [thread:$0]  %s600_s0, 256, %s18_s27, [#allocation3]  }
  0x24   :  { %s473_s14 = scalar_lea.hbm %s602_s2, 128 }
  0x25   :  { %p474_p2 = scmp.ne.s32.totalorder %s602_s2, %s473_s14  ;;  %p477_p3 = scmp.lt.u32.totalorder %s473_s14, %s602_s2 }
  0x27   :  { %p479_p4 = pnand %p477_p3, %p474_p2 }
  0x29   :  { %482 = shalt.err (!%p479_p4)
}
  0x2a   :  { %s483_s19 = scalar_lea.vmem %s40_s29, 128  ;;  %p488_p6 = scmp.lt.s32.totalorder %s40_s29, %s40_s29 }
  0x2b   :  { %p484_p5 = scmp.ne.s32.totalorder %s40_s29, %s483_s19  ;;  %p489_p7 = scmp.lt.s32.totalorder %s483_s19, %s483_s19 }
  0x2d   :  { %p490_p8 = por %p489_p7, %p488_p6 }
  0x2f   :  { %p491_p9 = pnand %p490_p8, %p484_p5 }
  0x31   :  { %494 = shalt.err (!%p491_p9)
}
  0x32   :  { %42 = dma.hbm_to_vmem [thread:$0]  %s602_s2, 128, %s40_s29, [#allocation6]  }
  0x33   :  { %517 = dma.done.wait [#allocation3], 256  }
  0x34   :  { %518 = vsyncadd [#allocation3], 4294967040 }
  0x35   :  { %519 = dma.done.wait [#allocation6], 2176  }
  0x36   :  { %520 = vsyncadd [#allocation6], 4294965120  ;;  %v411_v0 = vld [vmem:[#allocation5 + $0x40] sm:$0xff]   ;;  %v413_v2 = vld [vmem:[#allocation5 + $0x48] sm:$0xff]   ;;  %v528_v28 = vmov 0.0   ;;  %vm529_vm0 = vmmov 0  }
  0x37   :  { %v412_v1 = vld [vmem:[#allocation5] sm:$0xff]   ;;  %371 = vmatprep.subr.bf16.mxu0 %v411_v0  ;;  %v414_v3 = vld [vmem:[#allocation5 + $0x8] sm:$0xff]   ;;  %v415_v4 = vld [vmem:[#allocation5 + $0x50] sm:$0xff]   ;;  %395 = vmatprep.subr.mxu1 %v528_v28  ;;  %v530_v30 = vmov 0   ;;  %s531_s2 = smov [#allocation8]   ;;  %vm334_vm1 = vcmask 57344  }
  0x38   :  { %372 = vmatpush3.bf16.msra.mxu0 %v412_v1  ;;  %v416_v5 = vld [vmem:[#allocation5 + $0x10] sm:$0xff]   ;;  %v417_v6 = vld [vmem:[#allocation5 + $0x58] sm:$0xff]   ;;  %v419_v8 = vld [vmem:[#allocation5 + $0x60] sm:$0xff]   ;;  %397 = vmatprep.mubr.msk.f32.mxu1 %vm529_vm0, %v528_v28  ;;  %s342_s21 = sshll.u32 %s531_s2, 4  ;;  %s343_s21 = int_to_ptr.vmem [resolvable:$true] %s342_s21 }
  0x39   :  { %373 = vmatprep.subr.bf16.mxu0 %v413_v2  ;;  %v418_v7 = vld [vmem:[#allocation5 + $0x18] sm:$0xff]   ;;  %v420_v9 = vld [vmem:[#allocation5 + $0x20] sm:$0xff]   ;;  %v421_v10 = vld [vmem:[#allocation5 + $0x68] sm:$0xff]   ;;  %409 = vset.pattern.permute.xlu1 %v530_v30  ;;  %s495_s22 = scalar_lea.vmem %s343_s21, 16  ;;  %s499_s23 = scalar_lea.vmem %s343_s21, 32 }
  0x3a   :  { %v59_v11 = vld [vmem:[#allocation2 + $0x8] sm:$0xff]  ;;  %v422_v13 = vld [vmem:[#allocation5 + $0x28] sm:$0xff]   ;;  %v423_v14 = vld [vmem:[#allocation5 + $0x70] sm:$0xff]   ;;  %410 = vset.pattern.permute.xlu0 %v530_v30  ;;  %p496_p10 = scmp.ne.s32.totalorder %s343_s21, %s495_s22  ;;  %p500_p11 = scmp.lt.s32.totalorder %s343_s21, %s343_s21 }
  0x3b   :  { %v61_v12 = vpack.c.bf16 %v59_v11, %v59_v11  ;;  %v424_v15 = vld [vmem:[#allocation5 + $0x30] sm:$0xff]   ;;  %v425_v16 = vld [vmem:[#allocation5 + $0x78] sm:$0xff]   ;;  %v352_v21 = vld [vmem:[#allocation7] ss:$0 sm:$0xff]  ;;  %p501_p12 = scmp.lt.s32.totalorder %s499_s23, %s495_s22 }
  0x3c   :  { %374 = vmatpush3.bf16.msra.mxu0 %v414_v3  ;;  %v426_v17 = vld [vmem:[#allocation5 + $0x38] sm:$0xff]   ;;  %v58_v18 = vld [vmem:[#allocation2] sm:$0xff]  ;;  %v57_v29 = vld [vmem:[#allocation7 + $0x4] sm:$0x1] }
  0x3d   :  { %375 = vmatprep.subr.bf16.mxu0 %v415_v4  ;;  %226 = vmatprep.mubr.bf16.mxu0 %v61_v12  ;;  %v60_v19 = vpack.c.bf16 %v58_v18, %v58_v18  ;;  %v369_v41 = vld [vmem:[#allocation7 + $0x1] ss:$0 sm:$0xff]  ;;  %v370_v43 = vld [vmem:[#allocation7 + $0x2] ss:$0 sm:$0xff]  ;;  %v56_v47 = vld [vmem:[#allocation7 + $0x3] sm:$0x1]  ;;  %p502_p13 = por %p501_p12, %p500_p11 }
  0x3e   :  { %261 = vperm.xlu1 %409, %v57_v29  }
  0x3f   :  { %p503_p0 = pnand %p502_p13, %p496_p10 }
  0x40   :  { %376 = vmatpush3.bf16.msra.mxu0 %v416_v5 }
  0x41   :  { %377 = vmatprep.subr.bf16.mxu0 %v417_v6 }
  0x44   :  { %378 = vmatpush3.bf16.msra.mxu0 %v418_v7 }
  0x45   :  { %379 = vmatprep.subr.bf16.mxu0 %v419_v8 }
  0x48   :  { %380 = vmatpush3.bf16.msra.mxu0 %v420_v9 }
  0x49   :  { %381 = vmatprep.subr.bf16.mxu0 %v421_v10 }
  0x4c   :  { %382 = vmatpush3.bf16.msra.mxu0 %v422_v13 }
  0x4d   :  { %383 = vmatprep.subr.bf16.mxu0 %v423_v14 }
  0x50   :  { %384 = vmatpush3.bf16.msra.mxu0 %v424_v15 }
  0x51   :  { %385 = vmatprep.subr.bf16.mxu0 %v425_v16 }
  0x54   :  { %386 = vmatpush3.bf16.msra.mxu0 %v426_v17 }
  0x57   :  { %227 = vmatmul.mubr.bf16.vlgmr.msra.gmra.mrb[0].mxu0 %v60_v19 }
  0xbd   :  { %v262_v48 = vpop.permute.xlu1 %261 }
 0x12a   :  { %v387_v20 = vpop.f32.mrb[0].mxu0 }
 0x12b   :  { %v388_v22 = vpop.f32.mrb[1].mxu0 }
 0x12c   :  { %v389_v23 = vadd.f32 %v388_v22, %v387_v20  ;;  %v390_v24 = vpop.f32.mrb[2].mxu0 }
 0x12d   :  { %v391_v25 = vpop.f32.mrb[3].mxu0 }
 0x12e   :  { %v229_v26 = vadd.f32 %v389_v23, %v352_v21 }
 0x130   :  { %234 = vadd.xlane.f32.xlu0 %v229_v26  ;;  %v236_v27 = vmul.f32 %v229_v26, %v229_v26 }
 0x134   :  { %237 = vadd.xlane.f32.xlu0 %v236_v27 }
 0x1bd   :  { %v235_v31 = vpop.xlane.xlu0 %234 }
 0x1be   :  { %v239_v32 = vmul.f32 0.0078125, %v235_v31 }
 0x1c0   :  { %v241_v34 = vmul.f32 %v239_v32, %v239_v32  ;;  %v246_v39 = vsub.f32 %v229_v26, %v239_v32 }
 0x1c1   :  { %v238_v33 = vpop.xlane.xlu0 %237 }
 0x1c2   :  { %v240_v35 = vmul.f32 0.0078125, %v238_v33 }
 0x1c4   :  { %v242_v36 = vsub.f32 %v240_v35, %v241_v34 }
 0x1c6   :  { %v243_v37 = vmax.f32 %v242_v36, 0.0 }
 0x1c8   :  { %v244_v38 = vadd.f32 1e-05, %v243_v37 }
 0x1ca   :  { %427 = vrsqrt.f32 %v244_v38 }
 0x1d4   :  { %v428_v40 = vpop.eup %427 }
 0x1d5   :  { %v247_v42 = vmul.f32 %v428_v40, %v246_v39 }
 0x1d7   :  { %v252_v44 = vmul.f32 %v369_v41, %v247_v42 }
 0x1d9   :  { %v257_v45 = vadd.f32 %v370_v43, %v252_v44 }
 0x1db   :  { %v258_v46 = vmax.f32 %v257_v45, 0.0 }
 0x1dd   :  { %396 = vmatpush3.xpose.msra.mxu1 %v258_v46 }
 0x1e0   :  { %398 = vmatmul.mubr.f32.vlgmr.msra.gmra.mrb[0].mxu1 %v56_v47 }
 0x2b3   :  { %v330_v49 = vpop.f32.mrb[0].mxu1 }
 0x2b4   :  { %v331_v50 = vadd.f32 %v330_v49, %v262_v48  ;;  %v399_v51 = vpop.f32.mrb[1].mxu1 }
 0x2b6   :  { %335 = vst.msk [vmem:[#allocation8] sm:$0x1] %vm334_vm1, %v331_v50 }
 0x2b7   :  { %506 = shalt.err (!%p503_p0)
}
 0x2b8   :  { %s507_s26 = scalar_lea.hbm %s603_s3, 16 }
 0x2b9   :  { %p508_p1 = scmp.ne.s32.totalorder %s603_s3, %s507_s26  ;;  %p511_p2 = scmp.lt.u32.totalorder %s507_s26, %s603_s3 }
 0x2bb   :  { %p513_p3 = pnand %p511_p2, %p508_p1 }
 0x2bd   :  { %516 = shalt.err (!%p513_p3)
}
 0x2be   :  { %345 = dma.vmem_to_hbm [thread:$0]  %s343_s21, 16, %s603_s3, [#allocation4]  }
 0x2bf   :  { %521 = dma.done.wait [#allocation4], 16  }
 0x2c0   :  { %522 = vsyncadd [#allocation4], 4294967280 }
 0x2c1   :  { %349 = vsyncpa [#allocation3], 1 }
 0x2c2   :  { %350 = vsyncpa [#allocation6], 1 }
 0x2c3   :  { %351 = vsyncpa [#allocation4], 1 }

</bundles_post_ra>
